<compile_context>
chip_gen: v6e
topology: v6e:2x2x1
jax: 0.10.0
libtpu: 0.0.40
codegen_flags: <defaults>
</compile_context>

<pallas_src>
import functools
import math

import numpy as np

import jax
import jax.numpy as jnp
from jax.experimental import pallas as pl
from jax.experimental.pallas import tpu as pltpu


# ---------------------------------------------------------------------------
# Sinusoidal PE table (matches the PyTorch buffer: even cols = sin, odd = cos).
# ---------------------------------------------------------------------------
def build_pe_table(max_len: int, d_model: int) -> jnp.ndarray:
    assert d_model % 2 == 0, "d_model must be even (matches the PyTorch module)"
    position = jnp.arange(max_len, dtype=jnp.float32)[:, None]            # (L, 1)
    angular_speed = jnp.exp(
        jnp.arange(0, d_model, 2, dtype=jnp.float32)
        * (-math.log(10000.0) / d_model)
    )                                                                      # (D/2,)
    sin = jnp.sin(position * angular_speed)                               # (L, D/2)
    cos = jnp.cos(position * angular_speed)                               # (L, D/2)
    pe = jnp.stack([sin, cos], axis=-1).reshape(max_len, d_model)         # interleave
    return pe[None, :, :]                                                 # (1, L, D)


# ---------------------------------------------------------------------------
# Kernel body: one lane-dense tile, shared pe tile across the batch axis.
# ---------------------------------------------------------------------------
def _pe_kernel(x_ref, pe_ref, o_ref, *, scale):
    o_ref[...] = x_ref[...] * scale + pe_ref[...]


# ---------------------------------------------------------------------------
# Layout / tiling heuristics.
# ---------------------------------------------------------------------------
def _choose_lane_layout(seq_len: int, d_model: int):
    """Lane-dense 2D view (R, C) of the (S, D) plane with C % 128 == 0."""
    cols = seq_len * d_model
    for lane_width in (2048, 1024, 512, 256, 128):
        if cols % lane_width == 0:
            return cols // lane_width, lane_width
    # Fallback: natural (S, D) tiles (masked lanes if D < 128 — perf hazard only).
    return seq_len, d_model


@functools.lru_cache(maxsize=None)
def _generation_budget():
    """(max_tile_bytes, vmem_limit_bytes or None) for the local TPU generation."""
    kind = ""
    try:
        kind = jax.devices()[0].device_kind.lower()
    except Exception:
        pass
    if "v7" in kind:
        # v7x: only 64 MiB physical VMEM per TC but ~3.2 TB/s HBM -> be most
        # aggressive about tile size. 4 MiB tiles (<= 6 bufs = 24 MiB) with the
        # scoped limit raised to 48 MiB; 6-8 MiB tiles would also fit.
        return 4 << 20, 48 << 20
    if "v6" in kind:
        return 4 << 20, 64 << 20        # 128 MiB physical, 32 MiB default scoped
    if "v5" in kind:
        # v5e default scoped VMEM is only 16 MiB; at ~0.8 TB/s 2 MiB tiles are
        # already near-roofline.
        return 2 << 20, 32 << 20
    # Unknown chip / interpret mode: conservative tiles, default VMEM limit.
    return 2 << 20, None


def _choose_row_tile(rows: int, cols: int, itemsize: int, max_tile_bytes: int) -> int:
    """Sublane-aligned row tile, <= max_tile_bytes, balanced into >= 2 tiles."""
    sublane = {4: 8, 2: 16, 1: 32}.get(itemsize, 8)   # f32 / bf16 / int8 packing
    per_row_bytes = max(cols * itemsize, 1)
    tr_cap = max((max_tile_bytes // per_row_bytes) // sublane * sublane, sublane)
    if rows <= sublane:
        return rows                                   # single full-extent tile
    # >= 2 balanced tiles: keeps both v7x TensorCores busy on the "parallel"
    # axis and avoids a near-empty trailing pipeline step.
    n_tiles = max(pl.cdiv(rows, tr_cap), 2)
    return pl.cdiv(pl.cdiv(rows, n_tiles), sublane) * sublane


# ---------------------------------------------------------------------------
# pallas_call wrapper on the lane-dense (B, R, C) view.
# ---------------------------------------------------------------------------
def _pe_lane_dense(x3, pe3, scale, tile_rows, *, single_buffer_pe, vmem_limit_bytes):
    B, R, C = x3.shape
    row_tiles = pl.cdiv(R, tile_rows)
    itemsize = np.dtype(x3.dtype).itemsize

    pe_spec_kwargs = {}
    if single_buffer_pe:
        # pe's block index changes only once per row tile (once per B steps):
        # single-buffer it and leave the reclaimed VMEM to the x / out tiles.
        pe_spec_kwargs["pipeline_mode"] = pl.Buffered(1)

    cost = pl.CostEstimate(
        flops=2 * B * R * C,                               # one mul + one add / elem
        transcendentals=0,
        bytes_accessed=2 * B * R * C * itemsize + R * C * itemsize,
    )

    return pl.pallas_call(
        functools.partial(_pe_kernel, scale=scale),
        out_shape=jax.ShapeDtypeStruct((B, R, C), x3.dtype),
        grid_spec=pltpu.PrefetchScalarGridSpec(
            num_scalar_prefetch=0,
            # Batch is the innermost ("arbitrary") axis so the shared pe block
            # stays resident in VMEM across the whole inner batch loop.
            grid=(row_tiles, B),
            in_specs=[
                pl.BlockSpec((1, tile_rows, C), lambda r, b: (b, r, 0)),       # x
                pl.BlockSpec((1, tile_rows, C), lambda r, b: (0, r, 0),        # pe
                             **pe_spec_kwargs),
            ],
            out_specs=pl.BlockSpec((1, tile_rows, C), lambda r, b: (b, r, 0)),
        ),
        compiler_params=pltpu.CompilerParams(
            dimension_semantics=("parallel", "arbitrary"),
            vmem_limit_bytes=vmem_limit_bytes,
        ),
        cost_estimate=cost,
    )(x3, pe3)


# ---------------------------------------------------------------------------
# Module-level wrapper mirroring the PyTorch nn.Module.
# ---------------------------------------------------------------------------
class PositionalEncoding:
    """JAX/Pallas port of the PyTorch PositionalEncoding module."""

    def __init__(self, max_len: int, d_model: int):
        self.max_len = max_len
        self.d_model = d_model
        self.scale = float(math.sqrt(d_model))
        self.pe = build_pe_table(max_len, d_model)        # (1, max_len, d_model) f32
        self._pe_cache = {}                               # (seq_len, dtype) -> (1,R,C)

    def _prepared_pe(self, seq_len: int, dtype) -> jnp.ndarray:
        """Sliced, dtype-cast, lane-dense pe — computed once and cached."""
        key = (seq_len, np.dtype(dtype).name)
        if key not in self._pe_cache:
            rows, cols = _choose_lane_layout(seq_len, self.d_model)
            self._pe_cache[key] = jnp.asarray(
                self.pe[:, :seq_len, :], dtype=dtype).reshape(1, rows, cols)
        return self._pe_cache[key]

    def __call__(self, x: jnp.ndarray) -> jnp.ndarray:
        B, S, D = x.shape
        assert D == self.d_model, f"d_model mismatch: {D} vs {self.d_model}"
        assert S <= self.max_len, f"seq_len {S} exceeds max_len {self.max_len}"

        rows, cols = _choose_lane_layout(S, D)
        pe3 = self._prepared_pe(S, x.dtype)
        max_tile_bytes, vmem_limit_bytes = _generation_budget()
        tile_rows = _choose_row_tile(rows, cols, np.dtype(x.dtype).itemsize,
                                     max_tile_bytes)
        x3 = x.reshape(B, rows, cols)

        single_buffer_pe = B >= 4
        try:
            out3 = _pe_lane_dense(x3, pe3, self.scale, tile_rows,
                                  single_buffer_pe=single_buffer_pe,
                                  vmem_limit_bytes=vmem_limit_bytes)
        except Exception:
            if not single_buffer_pe:
                raise
            # Defensive fallback if this Pallas build rejects pl.Buffered(1).
            out3 = _pe_lane_dense(x3, pe3, self.scale, tile_rows,
                                  single_buffer_pe=False,
                                  vmem_limit_bytes=vmem_limit_bytes)
        return out3.reshape(B, S, D)


def _reference(x, pe_table):
    S, D = x.shape[1], x.shape[2]
    return x * math.sqrt(D) + pe_table[:, : S, :].astype(x.dtype)


if __name__ == "__main__":
    key = jax.random.PRNGKey(0)
    k1, k2, k3 = jax.random.split(key, 3)

    # 1) Small shape consistent with the module's forward: (batch, seq, d_model).
    batch, seq, d_model, max_len = 2, 8, 32, 16
    enc = PositionalEncoding(max_len, d_model)
    x_small = jax.random.normal(k1, (batch, seq, d_model), dtype=jnp.float32)
    out_small = jax.block_until_ready(enc(x_small))
    assert out_small.shape == (batch, seq, d_model)
    assert jnp.allclose(out_small, _reference(x_small, enc.pe), atol=1e-5, rtol=1e-5)

    # 2) f32, B=4: exercises the single-buffered pe path, >=2 balanced row
    #    tiles, and a PARTIAL trailing row tile (R=65 lane-dense rows).
    enc_med = PositionalEncoding(1024, 256)
    x_med = jax.random.normal(k2, (4, 520, 256), dtype=jnp.float32)
    out_med = jax.block_until_ready(enc_med(x_med))
    assert out_med.shape == x_med.shape
    assert jnp.allclose(out_med, _reference(x_med, enc_med.pe), atol=1e-4, rtol=1e-4)

    # 3) bf16: exercises sublane=16 row-tile rounding and the dtype-cast pe cache.
    enc_bf = PositionalEncoding(512, 384)
    x_bf = jax.random.normal(k3, (2, 512, 384), dtype=jnp.bfloat16)
    out_bf = jax.block_until_ready(enc_bf(x_bf))
    assert out_bf.shape == x_bf.shape
    assert jnp.allclose(out_bf.astype(jnp.float32),
                        _reference(x_bf, enc_bf.pe).astype(jnp.float32),
                        atol=5e-2, rtol=5e-2)

    print("KERNEL_OK")
</pallas_src>

<mosaic_0001>
module attributes {stable_mosaic.version = 11 : i64} {
  func.func @_pe_kernel(%arg0: i32, %arg1: i32, %arg2: memref<1x1x256xf32, #tpu.memory_space<vmem>>, %arg3: memref<1x1x256xf32, #tpu.memory_space<vmem>>, %arg4: memref<1x1x256xf32, #tpu.memory_space<vmem>>) attributes {dimension_semantics = [#tpu.dimension_semantics<parallel>, #tpu.dimension_semantics<arbitrary>], iteration_bounds = array<i64: 1, 2>, scalar_prefetch = 0 : i64, scratch_operands = 0 : i64, tpu.core_type = #tpu.core_type<tc>, window_params = [{transform_indices = @transform_0, window_bounds = array<i64: 1, 1, 256>}, {transform_indices = @transform_1, window_bounds = array<i64: 1, 1, 256>}, {transform_indices = @transform_2, window_bounds = array<i64: 1, 1, 256>}]} {
    %c0 = arith.constant 0 : index
    %c0_0 = arith.constant 0 : index
    %c0_1 = arith.constant 0 : index
    %0 = vector.load %arg2[%c0, %c0_0, %c0_1] : memref<1x1x256xf32, #tpu.memory_space<vmem>>, vector<1x1x256xf32>
    %cst = arith.constant 5.65685415 : f32
    %1 = vector.broadcast %cst : f32 to vector<1x1x256xf32>
    %2 = arith.mulf %0, %1 : vector<1x1x256xf32>
    %c0_2 = arith.constant 0 : index
    %c0_3 = arith.constant 0 : index
    %c0_4 = arith.constant 0 : index
    %3 = vector.load %arg3[%c0_2, %c0_3, %c0_4] : memref<1x1x256xf32, #tpu.memory_space<vmem>>, vector<1x1x256xf32>
    %4 = arith.addf %2, %3 : vector<1x1x256xf32>
    %c0_5 = arith.constant 0 : index
    %c0_6 = arith.constant 0 : index
    %c0_7 = arith.constant 0 : index
    %5 = vector.load %arg4[%c0_5, %c0_6, %c0_7] : memref<1x1x256xf32, #tpu.memory_space<vmem>>, vector<1x1x256xf32>
    tpu.vector_store %arg4[%c0_5, %c0_6, %c0_7], %4 {strides = array<i32>} : memref<1x1x256xf32, #tpu.memory_space<vmem>>, vector<1x1x256xf32>,
    return
  }
  func.func @transform_0(%arg0: i32, %arg1: i32) -> (i32, i32, i32) {
    %c0_i32 = arith.constant 0 : i32
    %c0_i32_0 = arith.constant 0 : i32
    return %arg1, %arg0, %c0_i32 : i32, i32, i32
  }
  func.func @transform_1(%arg0: i32, %arg1: i32) -> (i32, i32, i32) {
    %c0_i32 = arith.constant 0 : i32
    %c0_i32_0 = arith.constant 0 : i32
    %c0_i32_1 = arith.constant 0 : i32
    return %c0_i32, %arg0, %c0_i32_0 : i32, i32, i32
  }
  func.func @transform_2(%arg0: i32, %arg1: i32) -> (i32, i32, i32) {
    %c0_i32 = arith.constant 0 : i32
    %c0_i32_0 = arith.constant 0 : i32
    return %arg1, %arg0, %c0_i32 : i32, i32, i32
  }
}

</mosaic_0001>

<bundles_post_ra>
// kernel: tpu_custom_call.1
= control target key start
LH: loop header
LB: loop body
LE: loop exit
PB: predicated region body
PF: predicated region fallthrough
CT: control target
= control target key end

     0   :  { %7 = vsyncpa [#allocation3], 0  ;;  %s732_s0 = inlined_call_operand.hbm [shape: f32[2,1,256], index: 0, kind: input, shape index: {}]   ;;  %s733_s1 = inlined_call_operand.hbm [shape: f32[1,1,256], index: 1, kind: input, shape index: {}]   ;;  %s734_s2 = inlined_call_operand.hbm [shape: f32[2,1,256], index: 2, kind: output, shape index: {}]  }
   0x1   :  { %9 = vsyncpa [#allocation3 + $0x1], 0 }
   0x2   :  { %10 = vsyncpa [#allocation6], 0 }
   0x3   :  { %11 = vsyncpa [#allocation4], 0 }
   0x4   :  { %13 = vsyncpa [#allocation4 + $0x1], 0  ;;  %s571_s9 = smov 0   ;;  %s573_s10 = smov 0  }
   0x5   :  { %s575_s11 = smov 0   ;;  %s577_s12 = smov 0  }
   0x6   :  { %s579_s13 = smov 0   ;;  %s581_s14 = smov 0  }
   0x7 LB: > { %s321_s15 = sadd.s32 4294967295, %s551_s14   ;;  %s322_s16 = sadd.s32 4294967294, %s551_s14   ;;  %s551_s14 = sphi %s581_s14, %s19_s14   ;;  %s547_s13 = sphi %s579_s13, %s751_s13   ;;  %s543_s12 = sphi %s577_s12, %s750_s12   ;;  %s539_s11 = sphi %s575_s11, %s749_s11   ;;  %s535_s10 = sphi %s573_s10, %s748_s10   ;;  %s531_s9 = sphi %s571_s9, %s747_s9  }
   0x8   : > { %p53_p0 = scmp.ne.s32.totalorder %s535_s10, %s531_s9  ;;  %p605_p1 = scmp.eq.s32.totalorder %s321_s15, 0 }
   0x9   : > { %p609_p2 = scmp.eq.s32.totalorder %s321_s15, 1  ;;  %p111_p3 = scmp.eq.s32.totalorder %s322_s16, 1 }
   0xa   : > { %p615_p4 = por %p605_p1, %p53_p0  ;;  %p323_p5 = scmp.ge.s32.totalorder %s551_s14, 1 }
   0xb   : > { %p620_p6 = por %p111_p3, %p53_p0  ;;  %p118_p7 = scmp.lt.s32.totalorder %s551_s14, 3 }
   0xc   : > { %s738_s19 = scalar_select %p615_p4, 1, 0 }
   0xd   : > { %s739_s20 = scalar_select %p620_p6, 1, 0 }
   0xe   : > { %p625_p8 = pnand %p323_p5, %p118_p7  ;;  %s553_s22 = smov [#allocation5]  }
   0xf   : > { %s134_s23 = sshll.u32 %s553_s22, 4  ;;  %s28_s25 = sadd.s32 1, %s547_s13  ;;  %s135_s23 = int_to_ptr.vmem [resolvable:$true] %s134_s23 }
  0x10   : > { %p348_p10 = pneg %p625_p8  ;;  %s40_s26 = sadd.s32 1, %s539_s11 }
  0x11   : > { %p29_p12 = scmp.ge.s32.totalorder %s28_s25, 2  ;;  %s424_s27 = scalar_lea.vmem %s135_s23, 32 }
  0x12   : > { %p634_p11 = pnand %p348_p10, %p605_p1  ;;  %p425_p0 = scmp.ne.s32.totalorder %s135_s23, %s424_s27 }
  0x13   : > { %p432_p7 = scmp.lt.s32.totalorder %s135_s23, %s135_s23  ;;  %p433_p6 = scmp.lt.s32.totalorder %s424_s27, %s424_s27 }
  0x14   : > { %p415_p13 = pneg %p634_p11 }
  0x15   : > { %p434_p9 = por %p433_p6, %p432_p7 }
  0x16   : > { %p427_p3 = pnand %p425_p0, %p415_p13 }
  0x18   : > { %p428_p5 = pneg %p427_p3 }
  0x1a   : > { %p435_p4 = pnand %p434_p9, %p428_p5 }
  0x1c   : > { %438 = shalt.err (!%p435_p4)
}
  0x1d   : > { %351 = dma.hbm_to_vmem [thread:$0]  (!%p634_p11), %s733_s1, 32, %s135_s23, [#allocation6]  }
  0x1e   : > { %s753_s25 = smov (%p29_p12, %s28_s25), 0  ;;  %p47_p6 = scmp.ne.s32.totalorder %s539_s11, %s535_s10 }
  0x1f   : > { %p48_p4 = scmp.eq.s32.totalorder %s551_s14, 0  ;;  %s35_s30 = ssub.s32 %s547_s13, %s753_s25 }
  0x20   : > { %p361_p9 = scmp.lt.s32.totalorder %s551_s14, 2  ;;  %p38_p10 = scmp.eq.s32.totalorder %s35_s30, 0 }
  0x21   : > { %p49_p13 = por %p48_p4, %p47_p6  ;;  %p657_p0 = por %p609_p2, %p47_p6 }
  0x22   : > { %s145_s4 = sand.u32 1, %s539_s11   ;;  %s338_s7 = sshll.u32 %s547_s13, 5 }
  0x23   : > { %s663_s5 = scalar_select %p38_p10, %s539_s11, %s40_s26  }
  0x24   : > { %s326_s6 = sshll.u32 %s145_s4, 1  ;;  %s157_s16 = scalar_lea.hbm %s732_s0, %s338_s7 }
  0x25   : > { %s149_s22 = scalar_lea.vmem [#allocation2], %s326_s6  ;;  %p669_p11 = pnand %p361_p9, %p49_p13 }
  0x26   : > { %s159_s23 = sshll.u32 %s149_s22, 4  ;;  %s146_s18 = scalar_lea.sflag [#allocation3], %s145_s4  ;;  %s160_s23 = int_to_ptr.vmem [resolvable:$true] %s159_s23 }
  0x27   : > { %p441_p2 = pneg %p669_p11  ;;  %s452_s27 = scalar_lea.vmem %s160_s23, 32 }
  0x28   : > { %p453_p12 = scmp.ne.s32.totalorder %s160_s23, %s452_s27  ;;  %s554_s26 = smov [#allocation2]  }
  0x29   : > { %s457_s28 = sshll.u32 %s554_s26, 4  ;;  %s458_s28 = int_to_ptr.vmem [resolvable:$false] %s457_s28 }
  0x2a   : > { %p455_p3 = pnand %p453_p12, %p441_p2  ;;  %s459_s29 = scalar_lea.vmem %s458_s28, 64 }
  0x2b   : > { %p460_p7 = scmp.lt.s32.totalorder %s160_s23, %s458_s28  ;;  %p461_p6 = scmp.lt.s32.totalorder %s459_s29, %s452_s27 }
  0x2c   : > { %p456_p5 = pneg %p455_p3 }
  0x2d   : > { %p462_p4 = por %p461_p6, %p460_p7 }
  0x2f   : > { %p463_p10 = pnand %p462_p4, %p456_p5 }
  0x31   : > { %466 = shalt.err (!%p463_p10)
}
  0x32   : > { %355 = dma.hbm_to_vmem [thread:$0]  (!%p669_p11), %s157_s16, 32, %s160_s23, %s146_s18  }
  0x33   : > { %168 = sbr.rel (%p625_p8) target bundleno = 84 (0x54), region = 28  ;;  %s680_s30 = sand.u32 (!%p625_p8), 1, %s535_s10  }
  0x34   : > { %s330_s4 = sshll.u32 (!%p625_p8), %s680_s30, 1  ;;  %s171_s6 = scalar_lea.sflag (!%p625_p8), [#allocation3], %s680_s30 }
  0x35   : > { %s174_s7 = scalar_lea.vmem (!%p625_p8), [#allocation2], %s330_s4  ;;  %p744_p9 = scmp.ne.s32.totalorder (!%p625_p8), %s738_s19, 0 }
  0x38   : > { %518 = dma.done.wait (%p744_p9), %s171_s6, 32  }
  0x39   : > { %520 = vsyncadd (%p744_p9), %s171_s6, 4294967264 }
  0x3a   : > { %522 = dma.done.wait (%p605_p1), [#allocation6], 32  }
  0x3b   : > { %524 = vsyncadd (%p605_p1), [#allocation6], 4294967264  ;;  %v203_v0 = vlaneseq  ;;  %v199_v1 = vld [vmem:[%s174_s7] sm:$0x3]  ;;  %v201_v2 = vld [vmem:[#allocation5] sm:$0x3] }
  0x3c   : > { %s198_s21 = scalar_lea.vmem [#allocation7], %s330_s4  ;;  %s339_s15 = sshll.u32 %s543_s12, 5  ;;  %v200_v3 = vmul.f32 5.656854, %v199_v1 }
  0x3d   : > { %s225_s8 = sshll.u32 %s198_s21, 4  ;;  %vm205_vm0 = vcmp.lt.s32.totalorder %v203_v0, 256  ;;  %s223_s22 = scalar_lea.hbm %s734_s2, %s339_s15  ;;  %s226_s8 = int_to_ptr.vmem [resolvable:$true] %s225_s8 }
  0x3e   : > { %v202_v4 = vadd.f32 %v201_v2, %v200_v3  ;;  %s209_s17 = scalar_lea.sflag [#allocation4], %s680_s30  ;;  %s467_s23 = scalar_lea.vmem %s226_s8, 32 }
  0x3f   : > { %p468_p1 = scmp.ne.s32.totalorder %s226_s8, %s467_s23  ;;  %s555_s24 = smov [#allocation7]  }
  0x40   : > { %207 = vst.msk [vmem:[%s198_s21] sm:$0x3] %vm205_vm0, %v202_v4  ;;  %s471_s18 = sshll.u32 %s555_s24, 4  ;;  %s472_s18 = int_to_ptr.vmem [resolvable:$false] %s471_s18 }
  0x41   : > { %p469_p8 = pnand %p468_p1, %p657_p0  ;;  %s473_s27 = scalar_lea.vmem %s472_s18, 64 }
  0x42   : > { %p474_p11 = scmp.lt.s32.totalorder %s226_s8, %s472_s18  ;;  %p475_p2 = scmp.lt.s32.totalorder %s473_s27, %s467_s23 }
  0x43   : > { %p470_p13 = pneg %p469_p8 }
  0x44   : > { %p476_p12 = por %p475_p2, %p474_p11 }
  0x46   : > { %p477_p3 = pnand %p476_p12, %p470_p13 }
  0x48   : > { %480 = shalt.err (!%p477_p3)
}
  0x49   : > { %s481_s12 = scalar_lea.hbm %s223_s22, 32  ;;  %s485_s29 = scalar_lea.hbm %s734_s2, 64 }
  0x4a   : > { %p482_p5 = scmp.ne.s32.totalorder %s223_s22, %s481_s12  ;;  %p486_p4 = scmp.lt.s32.totalorder %s223_s22, %s734_s2 }
  0x4b   : > { %p487_p10 = scmp.lt.s32.totalorder %s485_s29, %s481_s12 }
  0x4c   : > { %p483_p7 = pnand %p482_p5, %p657_p0 }
  0x4d   : > { %p488_p9 = por %p487_p10, %p486_p4 }
  0x4e   : > { %p484_p6 = pneg %p483_p7 }
  0x50   : > { %p489_p1 = pnand %p488_p9, %p484_p6 }
  0x52   : > { %492 = shalt.err (!%p489_p1)
}
  0x53   : > { %346 = dma.vmem_to_hbm [thread:$0]  (%p657_p0), %s226_s8, 32, %s223_s22, %s209_s17  }
  0x54 PF: > { %s237_s6 = sand.u32 1, %s531_s9   ;;  %p745_p8 = scmp.ne.s32.totalorder %s739_s20, 0 }
  0x55   : > { %p746_p13 = scmp.ge.s32.totalorder %s551_s14, 2  ;;  %s238_s7 = scalar_lea.sflag [#allocation4], %s237_s6 }
  0x57   : > { %p357_p11 = pnand %p746_p13, %p745_p8 }
  0x59   : > { %p358_p2 = pneg %p357_p11 }
  0x5b   : > { %526 = dma.done.wait (%p358_p2), %s238_s7, 32  }
  0x5c   : > { %528 = vsyncadd (%p358_p2), %s238_s7, 4294967264  ;;  %s19_s14 = sadd.s32 1, %s551_s14   ;;  %s747_s9 = smov %s535_s10 }
  0x5d   : > { %p16_p12 = scmp.ge.s32.totalorder %s19_s14, 4   ;;  %s748_s10 = smov %s539_s11 }
  0x5e   : > { %s749_s11 = smov %s663_s5  ;;  %s750_s12 = smov %s547_s13 }
  0x5f   : > { %s751_s13 = smov %s753_s25  ;;  %18 = sbr.rel (!%p16_p12) target bundleno = 7 (0x7), region = 78 }
  0x64   :  { %243 = vsyncpa [#allocation3], 1 }
  0x65   :  { %245 = vsyncpa [#allocation3 + $0x1], 1 }
  0x66   :  { %246 = vsyncpa [#allocation6], 1 }
  0x67   :  { %247 = vsyncpa [#allocation4], 1 }
  0x68   :  { %249 = vsyncpa [#allocation4 + $0x1], 1 }

</bundles_post_ra>
